<compile_context>
chip_gen: v7x
topology: tpu7x:2x2x1
jax: 0.10.0
libtpu: 0.0.40
codegen_flags: <defaults>
</compile_context>

<pallas_src>
import functools

import jax
import jax.numpy as jnp
from jax import lax
from jax.experimental import pallas as pl
from jax.experimental.pallas import tpu as pltpu


# ----------------------------------------------------------------------------
# Fused kernel: one batch element per grid step.
#   x_ref      : (1, N, C)
#   w_qkv_ref  : (C, 3*inner)   (inner = H * Dh, bf16, scale folded into q cols)
#   w_proj_ref : (inner, C)     (only when project_out)
#   o_ref      : (1, N, C_out)
# ----------------------------------------------------------------------------
def _fused_qattention_kernel(*refs, num_heads, dim_head, mxu_dtype, project_out):
    if project_out:
        x_ref, w_qkv_ref, w_proj_ref, o_ref = refs
    else:
        x_ref, w_qkv_ref, o_ref = refs
        w_proj_ref = None

    inner = num_heads * dim_head

    # ---- qkv projection: (N, C) @ (C, 3*inner) -> (N, 3*inner), f32 accum ----
    x = x_ref[0].astype(mxu_dtype)                                    # (N, C)
    qkv = jnp.dot(x, w_qkv_ref[...], preferred_element_type=jnp.float32)

    # q already carries the 1/sqrt(Dh) scale (folded into the weight columns).
    q = qkv[:, 0 * inner:1 * inner].astype(mxu_dtype)                 # (N, inner)
    k = qkv[:, 1 * inner:2 * inner].astype(mxu_dtype)                 # (N, inner)
    v = qkv[:, 2 * inner:3 * inner].astype(mxu_dtype)                 # (N, inner)

    # ---- per-head attention; heads remain packed on the lane axis ----
    head_outs = []
    for h in range(num_heads):                        # static, fully unrolled
        sl = slice(h * dim_head, (h + 1) * dim_head)
        qh, kh, vh = q[:, sl], k[:, sl], v[:, sl]     # (N, Dh) each
        # q @ k^T without an explicit transpose: contract the last dims.
        s = lax.dot_general(qh, kh, (((1,), (1,)), ((), ())),
                            preferred_element_type=jnp.float32)       # (N, N) f32
        s = s - jnp.max(s, axis=-1, keepdims=True)                    # stable softmax
        p = jnp.exp(s)                                                # EUP
        p = p * pl.reciprocal(jnp.sum(p, axis=-1, keepdims=True), approx=True)
        oh = jnp.dot(p.astype(mxu_dtype), vh,
                     preferred_element_type=jnp.float32)              # (N, Dh)
        head_outs.append(oh)
    attn = jnp.concatenate(head_outs, axis=-1)        # (N, inner), lane-dense

    # ---- output projection ----
    if project_out:
        out = jnp.dot(attn.astype(mxu_dtype), w_proj_ref[...],
                      preferred_element_type=jnp.float32)             # (N, dim)
    else:
        out = attn
    o_ref[0] = out.astype(o_ref.dtype)


# ----------------------------------------------------------------------------
# Module wrapper (weights held in f32 master copies + bf16 MXU copies)
# ----------------------------------------------------------------------------
class QAttentionPallas:
    def __init__(self, dim, num_heads=8, dim_head=64, key=None,
                 mxu_dtype=jnp.bfloat16):
        self.dim = dim
        self.num_heads = num_heads
        self.dim_head = dim_head
        self.inner_dim = dim_head * num_heads
        self.project_out = not (num_heads == 1 and dim_head == dim)
        self.scale = float(dim_head) ** (-0.5)
        self.mxu_dtype = mxu_dtype

        if key is None:
            key = jax.random.PRNGKey(42)
        k1, k2 = jax.random.split(key)
        # weights stored as (in_features, out_features); deterministic init
        self.w_qkv = (
            jax.random.normal(k1, (dim, self.inner_dim * 3), jnp.float32) * 0.05
        )
        # Fold the softmax scale into the q columns of the MXU copy (free: done
        # once at construction, no per-call op).
        w_qkv_scaled = self.w_qkv.at[:, :self.inner_dim].multiply(self.scale)
        self._w_qkv_mxu = w_qkv_scaled.astype(mxu_dtype)
        if self.project_out:
            self.w_proj = (
                jax.random.normal(k2, (self.inner_dim, dim), jnp.float32) * 0.05
            )
            self._w_proj_mxu = self.w_proj.astype(mxu_dtype)
        else:
            self.w_proj = None
            self._w_proj_mxu = None

    def __call__(self, x):
        B, N, C = x.shape
        assert C == self.dim
        inner = self.inner_dim
        # when project_out is False, inner == dim, so out_dim == dim either way
        out_dim = self.dim if self.project_out else inner

        kernel = functools.partial(
            _fused_qattention_kernel,
            num_heads=self.num_heads,
            dim_head=self.dim_head,
            mxu_dtype=self.mxu_dtype,
            project_out=self.project_out,
        )

        x_spec = pl.BlockSpec((1, N, C), lambda b: (b, 0, 0))
        wqkv_spec = pl.BlockSpec((C, 3 * inner), lambda b: (0, 0))
        out_spec = pl.BlockSpec((1, N, out_dim), lambda b: (b, 0, 0))

        if self.project_out:
            in_specs = [x_spec, wqkv_spec,
                        pl.BlockSpec((inner, self.dim), lambda b: (0, 0))]
            args = (x, self._w_qkv_mxu, self._w_proj_mxu)
        else:
            in_specs = [x_spec, wqkv_spec]
            args = (x, self._w_qkv_mxu)

        return pl.pallas_call(
            kernel,
            out_shape=jax.ShapeDtypeStruct((B, N, out_dim), jnp.float32),
            grid_spec=pltpu.PrefetchScalarGridSpec(
                num_scalar_prefetch=0,
                grid=(B,),
                in_specs=in_specs,
                out_specs=out_spec,
            ),
            compiler_params=pltpu.CompilerParams(
                dimension_semantics=("parallel",),
                vmem_limit_bytes=32 * 1024 * 1024,
            ),
        )(*args)


# ----------------------------------------------------------------------------
# Pure-JAX f32 reference for sanity checking
# ----------------------------------------------------------------------------
def reference_forward(mod: QAttentionPallas, x):
    B, N, C = x.shape
    H, Dh = mod.num_heads, mod.dim_head
    qkv = (x.reshape(B * N, C) @ mod.w_qkv).reshape(B, N, 3, H, Dh)
    qkv = jnp.transpose(qkv, (2, 0, 3, 1, 4))
    q, k, v = qkv[0], qkv[1], qkv[2]
    s = jnp.einsum("bhnd,bhmd->bhnm", q, k) * mod.scale
    p = jax.nn.softmax(s, axis=-1)
    o = jnp.einsum("bhnm,bhmd->bhnd", p, v)
    o = jnp.transpose(o, (0, 2, 1, 3)).reshape(B, N, H * Dh)
    if mod.project_out:
        o = (o.reshape(B * N, H * Dh) @ mod.w_proj).reshape(B, N, mod.dim)
    return o


if __name__ == "__main__":
    # small shapes consistent with the module's forward: x is (B, N, C)
    B, N, C = 2, 8, 32
    num_heads, dim_head = 4, 8   # inner_dim = 32, project_out = True

    key = jax.random.PRNGKey(0)
    kx, kw = jax.random.split(key)
    x = jax.random.normal(kx, (B, N, C), jnp.float32)

    mod = QAttentionPallas(dim=C, num_heads=num_heads, dim_head=dim_head, key=kw)

    out = mod(x)
    out = jax.block_until_ready(out)

    ref = reference_forward(mod, x)
    assert out.shape == (B, N, C)
    # bf16 MXU operands with f32 accumulation / softmax -> loosened tolerance
    assert jnp.allclose(out, ref, atol=1e-2, rtol=1e-2), "mismatch vs reference"

    print("KERNEL_OK")
</pallas_src>

<mosaic_0001>
module attributes {stable_mosaic.version = 11 : i64} {
  func.func @_fused_qattention_kernel(%arg0: i32, %arg1: memref<1x8x32xf32, #tpu.memory_space<vmem>>, %arg2: memref<32x96xbf16, #tpu.memory_space<vmem>>, %arg3: memref<32x32xbf16, #tpu.memory_space<vmem>>, %arg4: memref<1x8x32xf32, #tpu.memory_space<vmem>>) attributes {dimension_semantics = [#tpu.dimension_semantics<parallel>], iteration_bounds = array<i64: 2>, scalar_prefetch = 0 : i64, scratch_operands = 0 : i64, tpu.core_type = #tpu.core_type<tc>, window_params = [{transform_indices = @transform_0, window_bounds = array<i64: 1, 8, 32>}, {pipeline_mode = #tpu.pipeline_mode<synchronous>, transform_indices = @transform_1, window_bounds = array<i64: 32, 96>}, {pipeline_mode = #tpu.pipeline_mode<synchronous>, transform_indices = @transform_2, window_bounds = array<i64: 32, 32>}, {transform_indices = @transform_3, window_bounds = array<i64: 1, 8, 32>}]} {
    %c0 = arith.constant 0 : index
    %c0_0 = arith.constant 0 : index
    %c0_1 = arith.constant 0 : index
    %0 = vector.load %arg1[%c0, %c0_0, %c0_1] : memref<1x8x32xf32, #tpu.memory_space<vmem>>, vector<1x8x32xf32>
    %1 = vector.shape_cast %0 : vector<1x8x32xf32> to vector<8x32xf32>
    %2 = arith.truncf %1 : vector<8x32xf32> to vector<8x32xbf16>
    %c0_2 = arith.constant 0 : index
    %c0_3 = arith.constant 0 : index
    %3 = vector.load %arg2[%c0_2, %c0_3] : memref<32x96xbf16, #tpu.memory_space<vmem>>, vector<32x96xbf16>
    %cst = arith.constant dense<0.000000e+00> : vector<8x96xf32>
    %4 = tpu.matmul %2, %3, %cst {dimension_numbers = #tpu.dot_dimension_numbers<[1], [0], [0], [1], [0, 0, 1, 1], [], []>} : vector<8x32xbf16>, vector<32x96xbf16>, vector<8x96xf32> -> vector<8x96xf32>
    %5 = vector.extract_strided_slice %4 {offsets = [0, 0], sizes = [8, 32], strides = [1, 1]} : vector<8x96xf32> to vector<8x32xf32>
    %6 = arith.truncf %5 : vector<8x32xf32> to vector<8x32xbf16>
    %7 = vector.extract_strided_slice %4 {offsets = [0, 32], sizes = [8, 32], strides = [1, 1]} : vector<8x96xf32> to vector<8x32xf32>
    %8 = arith.truncf %7 : vector<8x32xf32> to vector<8x32xbf16>
    %9 = vector.extract_strided_slice %4 {offsets = [0, 64], sizes = [8, 32], strides = [1, 1]} : vector<8x96xf32> to vector<8x32xf32>
    %10 = arith.truncf %9 : vector<8x32xf32> to vector<8x32xbf16>
    %11 = vector.extract_strided_slice %6 {offsets = [0, 0], sizes = [8, 8], strides = [1, 1]} : vector<8x32xbf16> to vector<8x8xbf16>
    %12 = vector.extract_strided_slice %8 {offsets = [0, 0], sizes = [8, 8], strides = [1, 1]} : vector<8x32xbf16> to vector<8x8xbf16>
    %13 = vector.extract_strided_slice %10 {offsets = [0, 0], sizes = [8, 8], strides = [1, 1]} : vector<8x32xbf16> to vector<8x8xbf16>
    %cst_4 = arith.constant dense<0.000000e+00> : vector<8x8xf32>
    %14 = tpu.matmul %11, %12, %cst_4 {dimension_numbers = #tpu.dot_dimension_numbers<[1], [1], [0], [0], [0, 0, 1, 0], [], []>} : vector<8x8xbf16>, vector<8x8xbf16>, vector<8x8xf32> -> vector<8x8xf32>
    %cst_5 = arith.constant dense<0xFF800000> : vector<8xf32>
    %15 = vector.multi_reduction <maximumf>, %14, %cst_5 [1] : vector<8x8xf32> to vector<8xf32>
    %16 = vector.shape_cast %15 : vector<8xf32> to vector<8x1xf32>
    %17 = vector.broadcast %16 : vector<8x1xf32> to vector<8x8xf32>
    %18 = arith.subf %14, %17 : vector<8x8xf32>
    %19 = math.exp %18 : vector<8x8xf32>
    %cst_6 = arith.constant dense<0.000000e+00> : vector<8xf32>
    %20 = vector.multi_reduction <add>, %19, %cst_6 [1] : vector<8x8xf32> to vector<8xf32>
    %21 = vector.shape_cast %20 : vector<8xf32> to vector<8x1xf32>
    %22 = tpu.reciprocal %21 {approx = true} : vector<8x1xf32> -> vector<8x1xf32>
    %23 = vector.broadcast %22 : vector<8x1xf32> to vector<8x8xf32>
    %24 = arith.mulf %19, %23 : vector<8x8xf32>
    %25 = arith.truncf %24 : vector<8x8xf32> to vector<8x8xbf16>
    %cst_7 = arith.constant dense<0.000000e+00> : vector<8x8xf32>
    %26 = tpu.matmul %25, %13, %cst_7 {dimension_numbers = #tpu.dot_dimension_numbers<[1], [0], [0], [1], [0, 0, 1, 1], [], []>} : vector<8x8xbf16>, vector<8x8xbf16>, vector<8x8xf32> -> vector<8x8xf32>
    %27 = vector.extract_strided_slice %6 {offsets = [0, 8], sizes = [8, 8], strides = [1, 1]} : vector<8x32xbf16> to vector<8x8xbf16>
    %28 = vector.extract_strided_slice %8 {offsets = [0, 8], sizes = [8, 8], strides = [1, 1]} : vector<8x32xbf16> to vector<8x8xbf16>
    %29 = vector.extract_strided_slice %10 {offsets = [0, 8], sizes = [8, 8], strides = [1, 1]} : vector<8x32xbf16> to vector<8x8xbf16>
    %cst_8 = arith.constant dense<0.000000e+00> : vector<8x8xf32>
    %30 = tpu.matmul %27, %28, %cst_8 {dimension_numbers = #tpu.dot_dimension_numbers<[1], [1], [0], [0], [0, 0, 1, 0], [], []>} : vector<8x8xbf16>, vector<8x8xbf16>, vector<8x8xf32> -> vector<8x8xf32>
    %cst_9 = arith.constant dense<0xFF800000> : vector<8xf32>
    %31 = vector.multi_reduction <maximumf>, %30, %cst_9 [1] : vector<8x8xf32> to vector<8xf32>
    %32 = vector.shape_cast %31 : vector<8xf32> to vector<8x1xf32>
    %33 = vector.broadcast %32 : vector<8x1xf32> to vector<8x8xf32>
    %34 = arith.subf %30, %33 : vector<8x8xf32>
    %35 = math.exp %34 : vector<8x8xf32>
    %cst_10 = arith.constant dense<0.000000e+00> : vector<8xf32>
    %36 = vector.multi_reduction <add>, %35, %cst_10 [1] : vector<8x8xf32> to vector<8xf32>
    %37 = vector.shape_cast %36 : vector<8xf32> to vector<8x1xf32>
    %38 = tpu.reciprocal %37 {approx = true} : vector<8x1xf32> -> vector<8x1xf32>
    %39 = vector.broadcast %38 : vector<8x1xf32> to vector<8x8xf32>
    %40 = arith.mulf %35, %39 : vector<8x8xf32>
    %41 = arith.truncf %40 : vector<8x8xf32> to vector<8x8xbf16>
    %cst_11 = arith.constant dense<0.000000e+00> : vector<8x8xf32>
    %42 = tpu.matmul %41, %29, %cst_11 {dimension_numbers = #tpu.dot_dimension_numbers<[1], [0], [0], [1], [0, 0, 1, 1], [], []>} : vector<8x8xbf16>, vector<8x8xbf16>, vector<8x8xf32> -> vector<8x8xf32>
    %43 = vector.extract_strided_slice %6 {offsets = [0, 16], sizes = [8, 8], strides = [1, 1]} : vector<8x32xbf16> to vector<8x8xbf16>
    %44 = vector.extract_strided_slice %8 {offsets = [0, 16], sizes = [8, 8], strides = [1, 1]} : vector<8x32xbf16> to vector<8x8xbf16>
    %45 = vector.extract_strided_slice %10 {offsets = [0, 16], sizes = [8, 8], strides = [1, 1]} : vector<8x32xbf16> to vector<8x8xbf16>
    %cst_12 = arith.constant dense<0.000000e+00> : vector<8x8xf32>
    %46 = tpu.matmul %43, %44, %cst_12 {dimension_numbers = #tpu.dot_dimension_numbers<[1], [1], [0], [0], [0, 0, 1, 0], [], []>} : vector<8x8xbf16>, vector<8x8xbf16>, vector<8x8xf32> -> vector<8x8xf32>
    %cst_13 = arith.constant dense<0xFF800000> : vector<8xf32>
    %47 = vector.multi_reduction <maximumf>, %46, %cst_13 [1] : vector<8x8xf32> to vector<8xf32>
    %48 = vector.shape_cast %47 : vector<8xf32> to vector<8x1xf32>
    %49 = vector.broadcast %48 : vector<8x1xf32> to vector<8x8xf32>
    %50 = arith.subf %46, %49 : vector<8x8xf32>
    %51 = math.exp %50 : vector<8x8xf32>
    %cst_14 = arith.constant dense<0.000000e+00> : vector<8xf32>
    %52 = vector.multi_reduction <add>, %51, %cst_14 [1] : vector<8x8xf32> to vector<8xf32>
    %53 = vector.shape_cast %52 : vector<8xf32> to vector<8x1xf32>
    %54 = tpu.reciprocal %53 {approx = true} : vector<8x1xf32> -> vector<8x1xf32>
    %55 = vector.broadcast %54 : vector<8x1xf32> to vector<8x8xf32>
    %56 = arith.mulf %51, %55 : vector<8x8xf32>
    %57 = arith.truncf %56 : vector<8x8xf32> to vector<8x8xbf16>
    %cst_15 = arith.constant dense<0.000000e+00> : vector<8x8xf32>
    %58 = tpu.matmul %57, %45, %cst_15 {dimension_numbers = #tpu.dot_dimension_numbers<[1], [0], [0], [1], [0, 0, 1, 1], [], []>} : vector<8x8xbf16>, vector<8x8xbf16>, vector<8x8xf32> -> vector<8x8xf32>
    %59 = vector.extract_strided_slice %6 {offsets = [0, 24], sizes = [8, 8], strides = [1, 1]} : vector<8x32xbf16> to vector<8x8xbf16>
    %60 = vector.extract_strided_slice %8 {offsets = [0, 24], sizes = [8, 8], strides = [1, 1]} : vector<8x32xbf16> to vector<8x8xbf16>
    %61 = vector.extract_strided_slice %10 {offsets = [0, 24], sizes = [8, 8], strides = [1, 1]} : vector<8x32xbf16> to vector<8x8xbf16>
    %cst_16 = arith.constant dense<0.000000e+00> : vector<8x8xf32>
    %62 = tpu.matmul %59, %60, %cst_16 {dimension_numbers = #tpu.dot_dimension_numbers<[1], [1], [0], [0], [0, 0, 1, 0], [], []>} : vector<8x8xbf16>, vector<8x8xbf16>, vector<8x8xf32> -> vector<8x8xf32>
    %cst_17 = arith.constant dense<0xFF800000> : vector<8xf32>
    %63 = vector.multi_reduction <maximumf>, %62, %cst_17 [1] : vector<8x8xf32> to vector<8xf32>
    %64 = vector.shape_cast %63 : vector<8xf32> to vector<8x1xf32>
    %65 = vector.broadcast %64 : vector<8x1xf32> to vector<8x8xf32>
    %66 = arith.subf %62, %65 : vector<8x8xf32>
    %67 = math.exp %66 : vector<8x8xf32>
    %cst_18 = arith.constant dense<0.000000e+00> : vector<8xf32>
    %68 = vector.multi_reduction <add>, %67, %cst_18 [1] : vector<8x8xf32> to vector<8xf32>
    %69 = vector.shape_cast %68 : vector<8xf32> to vector<8x1xf32>
    %70 = tpu.reciprocal %69 {approx = true} : vector<8x1xf32> -> vector<8x1xf32>
    %71 = vector.broadcast %70 : vector<8x1xf32> to vector<8x8xf32>
    %72 = arith.mulf %67, %71 : vector<8x8xf32>
    %73 = arith.truncf %72 : vector<8x8xf32> to vector<8x8xbf16>
    %cst_19 = arith.constant dense<0.000000e+00> : vector<8x8xf32>
    %74 = tpu.matmul %73, %61, %cst_19 {dimension_numbers = #tpu.dot_dimension_numbers<[1], [0], [0], [1], [0, 0, 1, 1], [], []>} : vector<8x8xbf16>, vector<8x8xbf16>, vector<8x8xf32> -> vector<8x8xf32>
    %75 = tpu.concatenate %26, %42, %58, %74 in 1 : vector<8x8xf32>, vector<8x8xf32>, vector<8x8xf32>, vector<8x8xf32> -> vector<8x32xf32>
    %76 = arith.truncf %75 : vector<8x32xf32> to vector<8x32xbf16>
    %c0_20 = arith.constant 0 : index
    %c0_21 = arith.constant 0 : index
    %77 = vector.load %arg3[%c0_20, %c0_21] : memref<32x32xbf16, #tpu.memory_space<vmem>>, vector<32x32xbf16>
    %cst_22 = arith.constant dense<0.000000e+00> : vector<8x32xf32>
    %78 = tpu.matmul %76, %77, %cst_22 {dimension_numbers = #tpu.dot_dimension_numbers<[1], [0], [0], [1], [0, 0, 1, 1], [], []>} : vector<8x32xbf16>, vector<32x32xbf16>, vector<8x32xf32> -> vector<8x32xf32>
    %c0_23 = arith.constant 0 : index
    %c0_24 = arith.constant 0 : index
    %c0_25 = arith.constant 0 : index
    %79 = vector.load %arg4[%c0_23, %c0_24, %c0_25] : memref<1x8x32xf32, #tpu.memory_space<vmem>>, vector<1x8x32xf32>
    %80 = vector.shape_cast %79 : vector<1x8x32xf32> to vector<8x32xf32>
    %81 = vector.shape_cast %78 : vector<8x32xf32> to vector<1x8x32xf32>
    tpu.vector_store %arg4[%c0_23, %c0_24, %c0_25], %81 {strides = array<i32>} : memref<1x8x32xf32, #tpu.memory_space<vmem>>, vector<1x8x32xf32>,
    return
  }
  func.func @transform_0(%arg0: i32) -> (i32, i32, i32) {
    %c0_i32 = arith.constant 0 : i32
    %c0_i32_0 = arith.constant 0 : i32
    %c0_i32_1 = arith.constant 0 : i32
    return %arg0, %c0_i32, %c0_i32_0 : i32, i32, i32
  }
  func.func @transform_1(%arg0: i32) -> (i32, i32) {
    %c0_i32 = arith.constant 0 : i32
    %c0_i32_0 = arith.constant 0 : i32
    %c0_i32_1 = arith.constant 0 : i32
    return %c0_i32, %c0_i32_0 : i32, i32
  }
  func.func @transform_2(%arg0: i32) -> (i32, i32) {
    %c0_i32 = arith.constant 0 : i32
    %c0_i32_0 = arith.constant 0 : i32
    %c0_i32_1 = arith.constant 0 : i32
    return %c0_i32, %c0_i32_0 : i32, i32
  }
  func.func @transform_3(%arg0: i32) -> (i32, i32, i32) {
    %c0_i32 = arith.constant 0 : i32
    %c0_i32_0 = arith.constant 0 : i32
    %c0_i32_1 = arith.constant 0 : i32
    return %arg0, %c0_i32, %c0_i32_0 : i32, i32, i32
  }
}

</mosaic_0001>

<bundles_post_ra>
// kernel: tpu_custom_call.1
= control target key start
LH: loop header
LB: loop body
LE: loop exit
PB: predicated region body
PF: predicated region fallthrough
CT: control target
= control target key end

     0   :  { %8 = vsyncpa [#allocation3], 0  ;;  %s1629_s0 = inlined_call_operand.hbm [shape: f32[2,8,32], index: 0, kind: input, shape index: {}]   ;;  %s1630_s1 = inlined_call_operand.hbm [shape: bf16[32,96], index: 1, kind: input, shape index: {}]   ;;  %s1631_s2 = inlined_call_operand.hbm [shape: bf16[32,32], index: 2, kind: input, shape index: {}]   ;;  %s1632_s3 = inlined_call_operand.hbm [shape: f32[2,8,32], index: 3, kind: output, shape index: {}]  }
   0x1   :  { %10 = vsyncpa [#allocation3 + $0x1], 0 }
   0x2   :  { %11 = vsyncpa [#allocation6], 0 }
   0x3   :  { %12 = vsyncpa [#allocation4], 0 }
   0x4   :  { %14 = vsyncpa [#allocation4 + $0x1], 0  ;;  %s1322_s12 = smov 0   ;;  %s1324_s13 = smov 0  }
   0x5   :  { %s1326_s14 = smov 0   ;;  %s1328_s15 = smov 0  }
   0x6 LB: > { %s1343_s16 = sadd.s32 4294967295, %s1278_s15   ;;  %s901_s17 = sadd.s32 4294967294, %s1278_s15   ;;  %s1278_s15 = sphi %s1328_s15, %s1652_s15   ;;  %s1274_s14 = sphi %s1326_s14, %s1651_s14   ;;  %s1270_s13 = sphi %s1324_s13, %s1650_s13   ;;  %s1266_s12 = sphi %s1322_s12, %s1649_s12  }
   0x7   : > { %p40_p0 = scmp.ne.s32.totalorder %s1270_s13, %s1266_s12  ;;  %p1633_p1 = scmp.eq.s32.totalorder %s1343_s16, 0 }
   0x8   : > { %p112_p3 = scmp.eq.s32.totalorder %s901_s17, 1  ;;  %p902_p5 = scmp.ge.s32.totalorder %s1278_s15, 1 }
   0x9   : > { %p1352_p4 = por %p1633_p1, %p40_p0  ;;  %p119_p7 = scmp.lt.s32.totalorder %s1278_s15, 3 }
   0xa   : > { %p1357_p6 = por %p112_p3, %p40_p0  ;;  %s1280_s21 = smov [#allocation5]  }
   0xb   : > { %s1636_s18 = scalar_select %p1352_p4, 1, 0 }
   0xc   : > { %s1637_s19 = scalar_select %p1357_p6, 1, 0 }
   0xd   : > { %p1362_p8 = pnand %p902_p5, %p119_p7  ;;  %s131_s22 = sshll.u32 %s1280_s21, 4  ;;  %s1366_s22 = int_to_ptr.vmem [resolvable:$true] %s131_s22 }
   0xe   : > { %s1281_s24 = smov [#allocation7]   ;;  %s1122_s28 = scalar_lea.hbm %s1630_s1, 256 }
   0xf   : > { %p1029_p9 = pneg %p1362_p8  ;;  %s144_s25 = sshll.u32 %s1281_s24, 4  ;;  %s1377_s25 = int_to_ptr.vmem [resolvable:$true] %s144_s25 }
  0x10   : > { %p1123_p12 = scmp.ne.s32.totalorder %s1630_s1, %s1122_s28  ;;  %p1129_p5 = scmp.lt.u32.totalorder %s1122_s28, %s1630_s1 }
  0x11   : > { %p1373_p11 = pnand %p1029_p9, %p1633_p1 }
  0x13   : > { %p1124_p13 = pneg %p1373_p11 }
  0x15   : > { %p1125_p0 = pnand %p1124_p13, %p1123_p12 }
  0x17   : > { %p1126_p3 = pneg %p1125_p0 }
  0x19   : > { %p1131_p7 = pnand %p1129_p5, %p1126_p3 }
  0x1b   : > { %1134 = shalt.err (!%p1131_p7)
}
  0x1c   : > { %s1135_s6 = scalar_lea.vmem %s1366_s22, 256  ;;  %p1143_p2 = scmp.lt.s32.totalorder %s1366_s22, %s1366_s22 }
  0x1d   : > { %p1136_p9 = scmp.ne.s32.totalorder %s1366_s22, %s1135_s6  ;;  %p1144_p12 = scmp.lt.s32.totalorder %s1135_s6, %s1135_s6 }
  0x1f   : > { %p1138_p10 = pnand %p1136_p9, %p1124_p13  ;;  %p1145_p0 = por %p1144_p12, %p1143_p2 }
  0x21   : > { %p1139_p1 = pneg %p1138_p10 }
  0x23   : > { %p1146_p6 = pnand %p1145_p0, %p1139_p1 }
  0x25   : > { %1149 = shalt.err (!%p1146_p6)
}
  0x26   : > { %s1282_s7 = smov 64   ;;  %s1283_s8 = smov 4  }
  0x27   : > { %1032 = dma.hbm_to_vmem [thread:$0]  (!%p1373_p11), %s1630_s1, 256, %s1366_s22, [#allocation6], %s1282_s7, %s1282_s7, %s1283_s8  }
  0x28   : > { %s1150_s21 = scalar_lea.hbm %s1631_s2, 256 }
  0x29   : > { %p1151_p2 = scmp.ne.s32.totalorder %s1631_s2, %s1150_s21  ;;  %p1157_p10 = scmp.lt.u32.totalorder %s1150_s21, %s1631_s2 }
  0x2b   : > { %p1153_p1 = pnand %p1151_p2, %p1124_p13 }
  0x2d   : > { %p1154_p6 = pneg %p1153_p1 }
  0x2f   : > { %p1159_p3 = pnand %p1157_p10, %p1154_p6 }
  0x31   : > { %1162 = shalt.err (!%p1159_p3)
}
  0x32   : > { %s1163_s22 = scalar_lea.vmem %s1377_s25, 256  ;;  %p1171_p12 = scmp.lt.s32.totalorder %s1377_s25, %s1377_s25 }
  0x33   : > { %p1164_p5 = scmp.ne.s32.totalorder %s1377_s25, %s1163_s22  ;;  %p1172_p0 = scmp.lt.s32.totalorder %s1163_s22, %s1163_s22 }
  0x35   : > { %p1166_p7 = pnand %p1164_p5, %p1124_p13  ;;  %p1173_p2 = por %p1172_p0, %p1171_p12 }
  0x37   : > { %p1167_p9 = pneg %p1166_p7 }
  0x39   : > { %p1174_p1 = pnand %p1173_p2, %p1167_p9 }
  0x3b   : > { %1177 = shalt.err (!%p1174_p1)
}
  0x3c   : > { %1035 = dma.hbm_to_vmem [thread:$0]  (!%p1373_p11), %s1631_s2, 256, %s1377_s25, [#allocation6], %s1282_s7, %s1282_s7, %s1283_s8  }
  0x3d   : > { %s1432_s4 = sadd.s32 1, %s1278_s15   ;;  %s27_s23 = sadd.s32 1, %s1274_s14 }
  0x3e   : > { %s24_s5 = ssub.s32 %s1278_s15, %s1432_s4  ;;  %p34_p13 = scmp.ne.s32.totalorder %s1274_s14, %s1270_s13 }
  0x3f   : > { %p25_p6 = scmp.eq.s32.totalorder %s24_s5, 0  ;;  %p35_p10 = scmp.eq.s32.totalorder %s1278_s15, 0 }
  0x40   : > { %p1640_p3 = scmp.eq.s32.totalorder %s1343_s16, 1  ;;  %p1046_p7 = scmp.lt.s32.totalorder %s1278_s15, 2 }
  0x41   : > { %s1448_s9 = scalar_select %p25_p6, %s1274_s14, %s27_s23  }
  0x42   : > { %p1442_p5 = por %p1640_p3, %p34_p13  ;;  %p36_p9 = por %p35_p10, %p34_p13 }
  0x43   : > { %s158_s10 = sand.u32 1, %s1274_s14   ;;  %s907_s25 = sshll.u32 %s1278_s15, 7 }
  0x44   : > { %s1641_s6 = scalar_select %p1442_p5, 1, 0 }
  0x45   : > { %s906_s11 = sshll.u32 %s158_s10, 3  ;;  %s1455_s17 = scalar_lea.hbm %s1629_s0, %s907_s25 }
  0x46   : > { %s162_s21 = scalar_lea.vmem [#allocation2], %s906_s11  ;;  %p1459_p11 = pnand %p1046_p7, %p36_p9 }
  0x47   : > { %s169_s24 = sshll.u32 %s162_s21, 4  ;;  %s159_s27 = scalar_lea.sflag [#allocation3], %s158_s10  ;;  %s1457_s24 = int_to_ptr.vmem [resolvable:$true] %s169_s24 }
  0x48   : > { %s1178_s28 = scalar_lea.hbm %s1455_s17, 128  ;;  %p1180_p0 = pneg %p1459_p11 }
  0x49   : > { %p1179_p12 = scmp.ne.s32.totalorder %s1455_s17, %s1178_s28  ;;  %s1183_s30 = scalar_lea.hbm %s1629_s0, 256 }
  0x4a   : > { %p1184_p13 = scmp.lt.u32.totalorder %s1455_s17, %s1629_s0  ;;  %p1185_p6 = scmp.lt.u32.totalorder %s1183_s30, %s1178_s28 }
  0x4b   : > { %p1181_p2 = pnand %p1180_p0, %p1179_p12  ;;  %p1187_p3 = scmp.lt.u32.totalorder %s1178_s28, %s1455_s17 }
  0x4c   : > { %p1186_p10 = por %p1185_p6, %p1184_p13 }
  0x4d   : > { %p1182_p1 = pneg %p1181_p2 }
  0x4e   : > { %p1188_p7 = por %p1187_p3, %p1186_p10 }
  0x50   : > { %p1189_p9 = pnand %p1188_p7, %p1182_p1 }
  0x52   : > { %1192 = shalt.err (!%p1189_p9)
}
  0x53   : > { %s1193_s10 = scalar_lea.vmem %s1457_s24, 128  ;;  %s1284_s11 = smov [#allocation2]  }
  0x54   : > { %p1194_p12 = scmp.ne.s32.totalorder %s1457_s24, %s1193_s10  ;;  %s1198_s25 = sshll.u32 %s1284_s11, 4  ;;  %s1199_s25 = int_to_ptr.vmem [resolvable:$false] %s1198_s25 }
  0x55   : > { %s1200_s7 = scalar_lea.vmem %s1199_s25, 256  ;;  %p1201_p4 = scmp.lt.s32.totalorder %s1457_s24, %s1199_s25 }
  0x56   : > { %p1196_p2 = pnand %p1194_p12, %p1180_p0  ;;  %p1202_p13 = scmp.lt.s32.totalorder %s1200_s7, %s1193_s10 }
  0x58   : > { %p1197_p5 = pneg %p1196_p2  ;;  %p1203_p6 = por %p1202_p13, %p1201_p4 }
  0x5a   : > { %p1204_p10 = pnand %p1203_p6, %p1197_p5 }
  0x5c   : > { %1207 = shalt.err (!%p1204_p10)
}
  0x5d   : > { %1039 = dma.hbm_to_vmem [thread:$0]  (!%p1459_p11), %s1455_s17, 128, %s1457_s24, %s159_s27  }
  0x5e   : > { %178 = sbr.rel (%p1362_p8) target bundleno = 1599 (0x63f), region = 32  ;;  %s1491_s8 = sand.u32 (!%p1362_p8), 1, %s1270_s13  }
  0x5f   : > { %s909_s21 = sshll.u32 (!%p1362_p8), %s1491_s8, 3  ;;  %s181_s28 = scalar_lea.sflag (!%p1362_p8), [#allocation3], %s1491_s8 }
  0x60   : > { %s184_s22 = scalar_lea.vmem (!%p1362_p8), [#allocation2], %s909_s21  ;;  %p1643_p4 = scmp.ne.s32.totalorder (!%p1362_p8), %s1636_s18, 0 }
  0x65   : > { %1253 = dma.done.wait (%p1643_p4), %s181_s28, 128  }
  0x66   : > { %1255 = vsyncadd (%p1643_p4), %s181_s28, 4294967168  ;;  %p1644_p5 = scmp.eq.s32.totalorder %s1343_s16, 0 }
  0x68   : > { %1257 = dma.done.wait (%p1644_p5), [#allocation6], 512   ;;  %p1645_p8 = pmov %p1644_p5 }
  0x69   : > { %v1285_v0 = vmov 0.0   ;;  %vm1286_vm0 = vmmov 0   ;;  %v1102_v1 = vld [vmem:[#allocation5] sm:$0xff]   ;;  %v1103_v2 = vld [vmem:[#allocation5 + $0x8] sm:$0xff]   ;;  %v216_v3 = vld [vmem:[%s184_s22] sm:$0xff]  ;;  %vm234_vm1 = vcmask 261120  }
  0x6a   : > { %1259 = vsyncadd (%p1645_p8), [#allocation6], 4294966784  ;;  %953 = vmatprep.subr.bf16.mxu0 %v1285_v0  ;;  %957 = vmatprep.mubr.msk.bf16.mxu0 %vm1286_vm0, %v1285_v0  ;;  %v217_v4 = vpack.c.bf16 %v216_v3, %v216_v3  ;;  %s1287_s18 = smov 120   ;;  %s1288_s20 = smov 96   ;;  %vm282_vm2 = vcmask 64512   ;;  %vm346_vm3 = vcmask 1043456  }
  0x6b   : > { %961 = vmatprep.subr.bf16.mxu1 %v1285_v0  ;;  %963 = vmatprep.mubr.msk.bf16.mxu1 %vm1286_vm0, %v1285_v0  ;;  %s1289_s17 = smov 80   ;;  %s1290_s24 = smov 88   ;;  %vm733_vm4 = vcmask 130048   ;;  %vm735_vm5 = vcmask 195584  }
  0x6c   : > { %954 = vmatpush3.bf16.msra.mxu0 %v1102_v1  ;;  %s1291_s26 = smov 72   ;;  %s1292_s27 = smov 112  }
  0x6d   : > { %955 = vmatprep.subr.bf16.mxu0 %v1285_v0  ;;  %s1293_s29 = smov 104   ;;  %s1294_s30 = smov 56  }
  0x6e   : > { %s1295_s23 = smov 64   ;;  %s1296_s5 = smov 40  }
  0x6f   : > { %s1297_s10 = smov 48   ;;  %s1298_s11 = smov 8  }
  0x70   : > { %956 = vmatpush3.bf16.msra.mxu0 %v1103_v2  ;;  %s1299_s25 = smov 16   ;;  %s1300_s7 = smov 24  }
  0x71   : > { %967 = vmatprep.subr.bf16.mxu0 %v1285_v0  ;;  %s928_s28 = sshll.u32 %s1343_s16, 7  ;;  %s214_s22 = scalar_lea.vmem [#allocation8], %s909_s21 }
  0x72   : > { %p1646_p0 = scmp.ne.s32.totalorder %s1641_s6, 0  ;;  %s1301_s21 = smov [#allocation8]  }
  0x73   : > { %958 = vmatmul.mubr.msk.bf16.vlgmr.msra.gmra.mrb[0].mxu0 %vm234_vm1, %v217_v4 }
  0x74   : > { %969 = vmatprep.mubr.msk.bf16.mxu0 %vm1286_vm0, %v1285_v0 }
 0x146   : > { %v272_v5 = vpop.f32.mrb[0].mxu0 }
 0x147   : > { %v1516_v6 = vpack.c.bf16 %v272_v5, %v272_v5  ;;  %v959_v7 = vpop.f32.mrb[1].mxu0 }
 0x148   : > { %v275_v8 = vpop.f32.mrb[2].mxu0 }
 0x149   : > { %390 = vrot.lane.b32.xlu1 %v1516_v6, %s1287_s18  ;;  %280 = vrot.lane.b32.xlu0 %v1516_v6, %s1288_s20  ;;  %v960_v9 = vpop.f32.mrb[3].mxu0  ;;  %s812_s18 = sshll.u32 %s214_s22, 4  ;;  %s1586_s18 = int_to_ptr.vmem [resolvable:$true] %s812_s18 }
 0x14a   : > { %s1208_s16 = scalar_lea.vmem %s1586_s18, 128 }
 0x14b   : > { %p1209_p11 = scmp.ne.s32.totalorder %s1586_s18, %s1208_s16 }
 0x14d   : > { %502 = vrot.lane.b32.xlu1 %v1516_v6, %s1289_s17  ;;  %392 = vrot.lane.b32.xlu0 %v1516_v6, %s1290_s24  ;;  %s1584_s24 = scalar_lea.hbm %s1632_s3, %s928_s28  ;;  %p1210_p1 = pnand %p1209_p11, %p1646_p0 }
 0x14f   : > { %p1211_p3 = pneg %p1210_p1 }
 0x151   : > { %612 = vrot.lane.b32.xlu1 %v1516_v6, %s1291_s26  ;;  %500 = vrot.lane.b32.xlu0 %v1516_v6, %s1292_s27  ;;  %s799_s26 = scalar_lea.sflag [#allocation4], %s1491_s8  ;;  %s1212_s27 = sshll.u32 %s1301_s21, 4  ;;  %s1213_s27 = int_to_ptr.vmem [resolvable:$false] %s1212_s27 }
 0x152   : > { %p1215_p7 = scmp.lt.s32.totalorder %s1586_s18, %s1213_s27 }
 0x155   : > { %610 = vrot.lane.b32.xlu0 %v1516_v6, %s1293_s29  ;;  %s1214_s29 = scalar_lea.vmem %s1213_s27, 256 }
 0x156   : > { %p1216_p9 = scmp.lt.s32.totalorder %s1214_s29, %s1208_s16 }
 0x158   : > { %p1217_p12 = por %p1216_p9, %p1215_p7 }
 0x15a   : > { %p1218_p2 = pnand %p1217_p12, %p1211_p3 }
 0x1bb   : > { %v281_v10 = vpop.permute.xlu0 %280  ;;  %v391_v13 = vpop.permute.xlu1 %390 }
 0x1bc   : > { %v287_v11 = vsel %vm282_vm2, %v281_v10, 0 }
 0x1bd   : > { %962 = vmatpush3.bf16.xpose.msra.mxu1 %v287_v11 }
 0x1be   : > { %973 = vmatprep.subr.bf16.mxu1 %v1285_v0 }
 0x1bf   : > { %v393_v12 = vpop.permute.xlu0 %392  ;;  %v503_v15 = vpop.permute.xlu1 %502 }
 0x1c0   : > { %v398_v14 = vsel %vm282_vm2, %v393_v12, 0  ;;  %v508_v16 = vsel %vm282_vm2, %v503_v15, 0 }
 0x1c3   : > { %v613_v17 = vpop.permute.xlu1 %612  ;;  %v501_v18 = vpop.permute.xlu0 %500 }
 0x1c4   : > { %964 = vmatmul.mubr.msk.bf16.vlgmr.msra.gmra.mrb[0].mxu1 %vm282_vm2, %v1516_v6  ;;  %v618_v19 = vsel %vm282_vm2, %v613_v17, 0 }
 0x1c5   : > { %974 = vmatpush3.bf16.xpose.msra.mxu1 %v398_v14  ;;  %975 = vmatprep.mubr.msk.bf16.mxu1 %vm1286_vm0, %v1285_v0 }
 0x1c6   : > { %985 = vmatprep.subr.bf16.mxu1 %v1285_v0 }
 0x1c7   : > { %v611_v20 = vpop.permute.xlu0 %610 }
 0x1cc   : > { %976 = vmatmul.mubr.msk.bf16.vlgmr.msra.gmra.mrb[4].mxu1 %vm282_vm2, %v391_v13 }
 0x1cd   : > { %986 = vmatpush3.bf16.xpose.msra.mxu1 %v508_v16  ;;  %987 = vmatprep.mubr.msk.bf16.mxu1 %vm1286_vm0, %v1285_v0 }
 0x1ce   : > { %997 = vmatprep.subr.bf16.mxu1 %v1285_v0 }
 0x1d4   : > { %988 = vmatmul.mubr.msk.bf16.vlgmr.msra.gmra.mrb[8].mxu1 %vm282_vm2, %v501_v18 }
 0x1d5   : > { %998 = vmatpush3.bf16.xpose.msra.mxu1 %v618_v19  ;;  %999 = vmatprep.mubr.msk.bf16.mxu1 %vm1286_vm0, %v1285_v0 }
 0x1d6   : > { %1009 = vmatprep.subr.bf16.mxu1 %v1285_v0 }
 0x1dc   : > { %1000 = vmatmul.mubr.msk.bf16.vlgmr.msra.gmra.mrb[12].mxu1 %vm282_vm2, %v611_v20 }
 0x1dd   : > { %1013 = vmatprep.mubr.msk.bf16.mxu1 %vm1286_vm0, %v1285_v0 }
 0x297   : > { %v323_v21 = vpop.f32.mrb[0].mxu1 }
 0x298   : > { %v965_v22 = vpop.f32.mrb[1].mxu1  ;;  %v329_v23 = vsel %vm282_vm2, %v323_v21, -inf }
 0x299   : > { %330 = vmax.xlane.f32.xlu1 %v329_v23  ;;  %v326_v24 = vpop.f32.mrb[2].mxu1 }
 0x29a   : > { %v966_v25 = vpop.f32.mrb[3].mxu1 }
 0x29f   : > { %v434_v26 = vpop.f32.mrb[4].mxu1 }
 0x2a0   : > { %v977_v27 = vpop.f32.mrb[5].mxu1  ;;  %v440_v28 = vsel %vm282_vm2, %v434_v26, -inf }
 0x2a1   : > { %441 = vmax.xlane.f32.xlu0 %v440_v28  ;;  %v437_v29 = vpop.f32.mrb[6].mxu1 }
 0x2a2   : > { %v978_v30 = vpop.f32.mrb[7].mxu1 }
 0x2a3   : > { %v1104_v30 = vld [vmem:[#allocation7] sm:$0xff]  }
 0x2a4   : > { %1010 = vmatpush3.bf16.msra.mxu1 %v1104_v30 }
 0x2a5   : > { %1011 = vmatprep.subr.bf16.mxu1 %v1285_v0 }
 0x2a7   : > { %v544_v31 = vpop.f32.mrb[8].mxu1 }
 0x2a8   : > { %v989_v32 = vpop.f32.mrb[9].mxu1  ;;  %v550_v33 = vsel %vm282_vm2, %v544_v31, -inf }
 0x2a9   : > { %551 = vmax.xlane.f32.xlu0 %v550_v33  ;;  %v547_v34 = vpop.f32.mrb[10].mxu1 }
 0x2aa   : > { %v990_v35 = vpop.f32.mrb[11].mxu1 }
 0x2af   : > { %v654_v36 = vpop.f32.mrb[12].mxu1 }
 0x2b0   : > { %v1001_v37 = vpop.f32.mrb[13].mxu1  ;;  %v660_v38 = vsel %vm282_vm2, %v654_v36, -inf }
 0x2b1   : > { %661 = vmax.xlane.f32.xlu1 %v660_v38  ;;  %v657_v39 = vpop.f32.mrb[14].mxu1 }
 0x2b2   : > { %v1002_v40 = vpop.f32.mrb[15].mxu1 }
 0x326   : > { %v331_v41 = vpop.xlane.xlu1 %330 }
 0x327   : > { %v332_v42 = vsub.f32 %v323_v21, %v331_v41 }
 0x329   : > { %v333_v43 = vmul.f32 1.442695, %v332_v42 }
 0x32b   : > { %1106 = vpow2.f32 %v333_v43 }
 0x32e   : > { %v442_v44 = vpop.xlane.xlu0 %441 }
 0x32f   : > { %v443_v45 = vsub.f32 %v434_v26, %v442_v44 }
 0x331   : > { %v444_v46 = vmul.f32 1.442695, %v443_v45 }
 0x333   : > { %1108 = vpow2.f32 %v444_v46 }
 0x335   : > { %v1107_v47 = vpop.eup %1106 }
 0x336   : > { %v552_v48 = vpop.xlane.xlu0 %551  ;;  %v335_v49 = vsel %vm282_vm2, %v1107_v47, 0.0 }
 0x337   : > { %v553_v50 = vsub.f32 %v544_v31, %v552_v48  ;;  %336 = vadd.xlane.f32.xlu0 %v335_v49  ;;  %v1105_v31 = vld [vmem:[#allocation7 + $0x8] sm:$0xff]  }
 0x338   : > { %1012 = vmatpush3.bf16.msra.mxu1 %v1105_v31 }
 0x339   : > { %v554_v51 = vmul.f32 1.442695, %v553_v50 }
 0x33b   : > { %1110 = vpow2.f32 %v554_v51 }
 0x33d   : > { %v1109_v52 = vpop.eup %1108 }
 0x33e   : > { %v446_v53 = vsel %vm282_vm2, %v1109_v52, 0.0  ;;  %v662_v56 = vpop.xlane.xlu1 %661 }
 0x33f   : > { %447 = vadd.xlane.f32.xlu1 %v446_v53  ;;  %v663_v57 = vsub.f32 %v654_v36, %v662_v56 }
 0x341   : > { %v664_v58 = vmul.f32 1.442695, %v663_v57 }
 0x343   : > { %1112 = vpow2.f32 %v664_v58 }
 0x345   : > { %v1111_v54 = vpop.eup %1110 }
 0x346   : > { %v556_v55 = vsel %vm282_vm2, %v1111_v54, 0.0 }
 0x347   : > { %557 = vadd.xlane.f32.xlu0 %v556_v55 }
 0x34d   : > { %v1113_v59 = vpop.eup %1112 }
 0x34e   : > { %v666_v60 = vsel %vm282_vm2, %v1113_v59, 0.0 }
 0x350   : > { %452 = vrot.lane.b32.xlu1 %v1516_v6, %s1294_s30 }
 0x35d   : > { %341 = vrot.lane.b32.xlu0 %v1516_v6, %s1295_s23 }
 0x361   : > { %672 = vrot.lane.b32.xlu0 %v1516_v6, %s1296_s5 }
 0x374   : > { %667 = vadd.xlane.f32.xlu1 %v666_v60 }
 0x385   : > { %562 = vrot.lane.b32.xlu1 %v1516_v6, %s1297_s10 }
 0x3c4   : > { %v337_v61 = vpop.xlane.xlu0 %336 }
 0x3c5   : > { %1114 = vrcp.f32 %v337_v61 }
 0x3cc   : > { %v448_v62 = vpop.xlane.xlu1 %447 }
 0x3cd   : > { %1116 = vrcp.f32 %v448_v62 }
 0x3cf   : > { %v1115_v63 = vpop.eup %1114 }
 0x3d0   : > { %v339_v2 = vmul.f32 %v1115_v63, %v1107_v47  ;;  %v453_v5 = vpop.permute.xlu1 %452 }
 0x3d1   : > { %v458_v9 = vsel %vm346_vm3, %v453_v5, 0 }
 0x3d2   : > { %v340_v7 = vpack.c.bf16 %v339_v2, %v339_v2 }
 0x3d4   : > { %v558_v1 = vpop.xlane.xlu0 %557 }
 0x3d5   : > { %1118 = vrcp.f32 %v558_v1 }
 0x3d7   : > { %v1117_v8 = vpop.eup %1116 }
 0x3d8   : > { %v342_v3 = vpop.permute.xlu0 %341  ;;  %v450_v6 = vmul.f32 %v1117_v8, %v1109_v52 }
 0x3d9   : > { %v348_v4 = vsel %vm346_vm3, %v342_v3, 0 }
 0x3da   : > { %968 = vmatpush3.bf16.msra.mxu0 %v348_v4  ;;  %v451_v10 = vpack.c.bf16 %v450_v6, %v450_v6 }
 0x3db   : > { %979 = vmatprep.subr.bf16.mxu0 %v1285_v0 }
 0x3dc   : > { %v673_v16 = vpop.permute.xlu0 %672 }
 0x3dd   : > { %970 = vmatmul.mubr.msk.bf16.vlgmr.msra.gmra.mrb[4].mxu0 %vm282_vm2, %v340_v7  ;;  %v678_v18 = vsel %vm346_vm3, %v673_v16, 0 }
 0x3de   : > { %980 = vmatpush3.bf16.msra.mxu0 %v458_v9  ;;  %981 = vmatprep.mubr.msk.bf16.mxu0 %vm1286_vm0, %v1285_v0 }
 0x3df   : > { %991 = vmatprep.subr.bf16.mxu0 %v1285_v0  ;;  %v1119_v11 = vpop.eup %1118 }
 0x3e0   : > { %v560_v13 = vmul.f32 %v1119_v11, %v1111_v54 }
 0x3e2   : > { %v561_v17 = vpack.c.bf16 %v560_v13, %v560_v13 }
 0x3e5   : > { %982 = vmatmul.mubr.msk.bf16.vlgmr.msra.gmra.mrb[8].mxu0 %vm282_vm2, %v451_v10 }
 0x3e6   : > { %993 = vmatprep.mubr.msk.bf16.mxu0 %vm1286_vm0, %v1285_v0 }
 0x401   : > { %v668_v12 = vpop.xlane.xlu1 %667 }
 0x402   : > { %1120 = vrcp.f32 %v668_v12 }
 0x405   : > { %v563_v14 = vpop.permute.xlu1 %562 }
 0x406   : > { %v568_v15 = vsel %vm346_vm3, %v563_v14, 0 }
 0x407   : > { %992 = vmatpush3.bf16.msra.mxu0 %v568_v15 }
 0x408   : > { %1003 = vmatprep.subr.bf16.mxu0 %v1285_v0 }
 0x40a   : > { %994 = vmatmul.mubr.msk.bf16.vlgmr.msra.gmra.mrb[12].mxu0 %vm282_vm2, %v561_v17 }
 0x40b   : > { %1004 = vmatpush3.bf16.msra.mxu0 %v678_v18  ;;  %1005 = vmatprep.mubr.msk.bf16.mxu0 %vm1286_vm0, %v1285_v0 }
 0x40c   : > { %v1121_v19 = vpop.eup %1120 }
 0x40d   : > { %v670_v20 = vmul.f32 %v1121_v19, %v1113_v59 }
 0x40f   : > { %v671_v21 = vpack.c.bf16 %v670_v20, %v670_v20 }
 0x412   : > { %1006 = vmatmul.mubr.msk.bf16.vlgmr.msra.gmra.mrb[16].mxu0 %vm282_vm2, %v671_v21 }
 0x4b0   : > { %v384_v22 = vpop.f32.mrb[4].mxu0 }
 0x4b1   : > { %v971_v23 = vpop.f32.mrb[5].mxu0 }
 0x4b2   : > { %v387_v24 = vpop.f32.mrb[6].mxu0 }
 0x4b3   : > { %v972_v25 = vpop.f32.mrb[7].mxu0 }
 0x4b8   : > { %v494_v26 = vpop.f32.mrb[8].mxu0 }
 0x4b9   : > { %721 = vrot.lane.b32.xlu1 %v494_v26, %s1298_s11  ;;  %v983_v27 = vpop.f32.mrb[9].mxu0 }
 0x4ba   : > { %v497_v28 = vpop.f32.mrb[10].mxu0 }
 0x4bb   : > { %v984_v29 = vpop.f32.mrb[11].mxu0 }
 0x4dd   : > { %v604_v32 = vpop.f32.mrb[12].mxu0 }
 0x4de   : > { %725 = vrot.lane.b32.xlu0 %v604_v32, %s1299_s25  ;;  %v995_v33 = vpop.f32.mrb[13].mxu0 }
 0x4df   : > { %v607_v34 = vpop.f32.mrb[14].mxu0 }
 0x4e0   : > { %v996_v35 = vpop.f32.mrb[15].mxu0 }
 0x4e5   : > { %v714_v36 = vpop.f32.mrb[16].mxu0 }
 0x4e6   : > { %729 = vrot.lane.b32.xlu1 %v714_v36, %s1300_s7  ;;  %v1007_v37 = vpop.f32.mrb[17].mxu0 }
 0x4e7   : > { %v717_v38 = vpop.f32.mrb[18].mxu0 }
 0x4e8   : > { %v1008_v39 = vpop.f32.mrb[19].mxu0 }
 0x52b   : > { %v722_v40 = vpop.permute.xlu1 %721 }
 0x52c   : > { %v732_v0 = vsel %vm282_vm2, %v384_v22, %v722_v40 }
 0x550   : > { %v726_v41 = vpop.permute.xlu0 %725 }
 0x551   : > { %v734_v42 = vsel %vm733_vm4, %v732_v0, %v726_v41 }
 0x558   : > { %v730_v43 = vpop.permute.xlu1 %729 }
 0x559   : > { %v736_v44 = vsel %vm735_vm5, %v734_v42, %v730_v43 }
 0x55a   : > { %v737_v45 = vpack.c.bf16 %v736_v44, %v736_v44 }
 0x55c   : > { %1014 = vmatmul.mubr.msk.bf16.vlgmr.msra.gmra.mrb[16].mxu1 %vm234_vm1, %v737_v45 }
 0x62f   : > { %v791_v46 = vpop.f32.mrb[16].mxu1 }
 0x630   : > { %797 = vst.msk [vmem:[%s214_s22] sm:$0xff] %vm234_vm1, %v791_v46  ;;  %v1015_v47 = vpop.f32.mrb[17].mxu1 }
 0x631   : > { %v794_v48 = vpop.f32.mrb[18].mxu1 }
 0x632   : > { %1221 = shalt.err (!%p1218_p2)
}
 0x633   : > { %s1222_s8 = scalar_lea.hbm %s1584_s24, 128  ;;  %s1226_s5 = scalar_lea.hbm %s1632_s3, 256 }
 0x634   : > { %p1223_p13 = scmp.ne.s32.totalorder %s1584_s24, %s1222_s8  ;;  %p1227_p4 = scmp.lt.u32.totalorder %s1584_s24, %s1632_s3 }
 0x635   : > { %p1228_p5 = scmp.lt.u32.totalorder %s1226_s5, %s1222_s8  ;;  %p1230_p11 = scmp.lt.u32.totalorder %s1222_s8, %s1584_s24 }
 0x636   : > { %p1224_p6 = pnand %p1223_p13, %p1646_p0 }
 0x637   : > { %p1229_p8 = por %p1228_p5, %p1227_p4 }
 0x638   : > { %p1225_p10 = pneg %p1224_p6 }
 0x639   : > { %p1231_p1 = por %p1230_p11, %p1229_p8 }
 0x63b   : > { %p1232_p3 = pnand %p1231_p1, %p1225_p10 }
 0x63d   : > { %1235 = shalt.err (!%p1232_p3)
}
 0x63e   : > { %1027 = dma.vmem_to_hbm [thread:$0]  (%p1646_p0), %s1586_s18, 128, %s1584_s24, %s799_s26   ;;  %v1016_v49 = vpop.f32.mrb[19].mxu1 }
 0x63f PF: > { %s824_s25 = sand.u32 1, %s1266_s12   ;;  %p1647_p7 = scmp.ne.s32.totalorder %s1637_s19, 0 }
 0x640   : > { %p1648_p9 = scmp.ge.s32.totalorder %s1278_s15, 2  ;;  %s825_s7 = scalar_lea.sflag [#allocation4], %s824_s25 }
 0x642   : > { %p1041_p12 = pnand %p1648_p9, %p1647_p7 }
 0x644   : > { %1261 = dma.done.wait (!%p1041_p12), %s825_s7, 128  }
 0x645   : > { %1263 = vsyncadd (!%p1041_p12), %s825_s7, 4294967168  ;;  %p17_p2 = scmp.ge.s32.totalorder %s1432_s4, 4   ;;  %s1649_s12 = smov %s1270_s13 }
 0x646   : > { %s1650_s13 = smov %s1274_s14  ;;  %s1651_s14 = smov %s1448_s9 }
 0x647   : > { %s1652_s15 = smov %s1432_s4  ;;  %19 = sbr.rel (!%p17_p2) target bundleno = 6 (0x6), region = 85 }
 0x64e   :  { %830 = vsyncpa [#allocation3], 1 }
 0x64f   :  { %832 = vsyncpa [#allocation3 + $0x1], 1 }
 0x650   :  { %833 = vsyncpa [#allocation6], 1 }
 0x651   :  { %834 = vsyncpa [#allocation4], 1 }
 0x652   :  { %836 = vsyncpa [#allocation4 + $0x1], 1 }

</bundles_post_ra>
